<compile_context>
chip_gen: v6e
topology: v6e:2x2x1
jax: 0.10.0
libtpu: 0.0.40
codegen_flags: <defaults>
</compile_context>

<pallas_src>
import functools

import jax
import jax.numpy as jnp
from jax import lax
from jax.experimental import pallas as pl
from jax.experimental.pallas import tpu as pltpu


def _round_up(x, m):
    return (x + m - 1) // m * m


# ----------------------------- Pallas kernel --------------------------------

def _fused_matmul_kernel(*refs, n_extra, relu):
    """One (tm, tn) output tile of  maybe_relu(x @ w + bias [+ res]).

    Grid = (M tiles, Cout tiles, K tiles); K is the reduction axis (last,
    "arbitrary").  `acc_ref` is an f32 VMEM accumulator that lives across the
    K steps; the epilogue (bias, optional residual or fused shortcut matmul,
    relu, downcast) runs on the last K step only.
    """
    x_ref, w_ref, b_ref = refs[0], refs[1], refs[2]
    extra = refs[3:3 + n_extra]
    o_ref = refs[3 + n_extra]
    acc_ref = refs[4 + n_extra]

    k = pl.program_id(2)

    @pl.when(k == 0)
    def _init():
        acc_ref[...] = jnp.zeros_like(acc_ref)

    acc_ref[...] += jnp.dot(x_ref[...], w_ref[...],
                            preferred_element_type=jnp.float32)

    @pl.when(k == pl.num_programs(2) - 1)
    def _finalize():
        y = acc_ref[...] + b_ref[...]
        if n_extra == 1:      # precomputed residual tile (identity shortcut)
            y = y + extra[0][...].astype(jnp.float32)
        elif n_extra == 2:    # fused 1x1 shortcut conv:  + x_sc @ w_sc
            y = y + jnp.dot(extra[0][...], extra[1][...],
                            preferred_element_type=jnp.float32)
        if relu:
            y = jnp.maximum(y, 0.0)
        o_ref[...] = y.astype(o_ref.dtype)


def fused_matmul(x2d, w2d, bias, *, relu, residual=None, res_x=None,
                 res_w=None, out_dtype=jnp.bfloat16, tm=512, tn=256, tk=512):
    """maybe_relu(x2d @ w2d + bias [+ residual | + res_x @ res_w]).

    x2d:        (M, K)      activations (cast to bf16)
    w2d:        (K, Cout)   BN-scale-folded weights
    bias:       (Cout,)     folded BN bias (already merged with the shortcut
                            bias when res_x/res_w are given)
    residual:   (M, Cout)   optional precomputed residual (identity shortcut)
    res_x/res_w:(M, Ksc)/(Ksc, Cout)  optional fused 1x1 shortcut conv
    Returns (M, Cout) in `out_dtype`.
    """
    M, K = x2d.shape
    Kw, Cout = w2d.shape
    assert K == Kw
    assert residual is None or res_x is None

    # --- tile sizes / padded problem sizes (lane dim padded to 128) ---------
    Cp = _round_up(Cout, 128)
    tn = tn if Cp % tn == 0 else 128
    tm = tm if M >= tm else _round_up(M, 8)
    Mp = _round_up(M, tm)
    Kp128 = _round_up(K, 128)
    tk = tk if Kp128 > tk else Kp128
    Kp = _round_up(Kp128, tk)

    xb = jnp.pad(x2d.astype(jnp.bfloat16), ((0, Mp - M), (0, Kp - K)))
    wb = jnp.pad(w2d.astype(jnp.bfloat16), ((0, Kp - K), (0, Cp - Cout)))
    bb = jnp.pad(bias.astype(jnp.float32), (0, Cp - Cout)).reshape(1, Cp)

    grid = (Mp // tm, Cp // tn, Kp // tk)
    in_specs = [
        pl.BlockSpec((tm, tk), lambda i, j, k: (i, k)),
        pl.BlockSpec((tk, tn), lambda i, j, k: (k, j)),
        pl.BlockSpec((1, tn), lambda i, j, k: (0, j)),
    ]
    args = [xb, wb, bb]
    flops = 2 * Mp * Kp * Cp
    bytes_accessed = xb.size * 2 + wb.size * 2 + bb.size * 4

    if residual is not None:
        rb = jnp.pad(residual.astype(jnp.bfloat16),
                     ((0, Mp - M), (0, Cp - Cout)))
        in_specs.append(pl.BlockSpec((tm, tn), lambda i, j, k: (i, j)))
        args.append(rb)
        n_extra = 1
        bytes_accessed += rb.size * 2
    elif res_x is not None:
        Msc, Ksc = res_x.shape
        assert Msc == M and res_w.shape == (Ksc, Cout)
        Kscp = _round_up(Ksc, 128)
        rxb = jnp.pad(res_x.astype(jnp.bfloat16),
                      ((0, Mp - M), (0, Kscp - Ksc)))
        rwb = jnp.pad(res_w.astype(jnp.bfloat16),
                      ((0, Kscp - Ksc), (0, Cp - Cout)))
        in_specs.append(pl.BlockSpec((tm, Kscp), lambda i, j, k: (i, 0)))
        in_specs.append(pl.BlockSpec((Kscp, tn), lambda i, j, k: (0, j)))
        args.extend([rxb, rwb])
        n_extra = 2
        flops += 2 * Mp * Kscp * Cp
        bytes_accessed += rxb.size * 2 + rwb.size * 2
    else:
        n_extra = 0

    out_bytes = Mp * Cp * (4 if out_dtype == jnp.float32 else 2)
    kernel = functools.partial(_fused_matmul_kernel, n_extra=n_extra,
                               relu=relu)

    out = pl.pallas_call(
        kernel,
        out_shape=jax.ShapeDtypeStruct((Mp, Cp), out_dtype),
        grid=grid,
        in_specs=in_specs,
        out_specs=pl.BlockSpec((tm, tn), lambda i, j, k: (i, j)),
        scratch_shapes=[pltpu.VMEM((tm, tn), jnp.float32)],
        compiler_params=pltpu.CompilerParams(
            dimension_semantics=("parallel", "parallel", "arbitrary"),
            vmem_limit_bytes=48 * 1024 * 1024),
        cost_estimate=pl.CostEstimate(
            flops=int(flops), transcendentals=0,
            bytes_accessed=int(bytes_accessed + out_bytes)),
    )(*args)
    return out[:M, :Cout]


# --------------------------- parameter handling -----------------------------

def _fold_bn(gamma, beta, mean, var, eps=1e-5):
    scale = gamma / jnp.sqrt(var + eps)
    bias = beta - mean * scale
    return scale, bias


def init_params(key, dim_in, dim_out, dim_inner, use_temp_conv, temp_stride,
                stride):
    kt = 1 + 2 * use_temp_conv
    ks = jax.random.split(key, 16)

    def conv_w(k, shape):
        fan_in = shape[1] * shape[2] * shape[3] * shape[4]
        return (jax.random.normal(k, shape, jnp.float32) /
                jnp.sqrt(jnp.float32(fan_in)))

    def bn(k, c):
        k1, k2, k3, k4 = jax.random.split(k, 4)
        gamma = 1.0 + 0.1 * jax.random.normal(k1, (c,), jnp.float32)
        beta = 0.1 * jax.random.normal(k2, (c,), jnp.float32)
        mean = 0.1 * jax.random.normal(k3, (c,), jnp.float32)
        var = 1.0 + 0.1 * jax.random.uniform(k4, (c,), jnp.float32)
        return gamma, beta, mean, var

    p = {}
    # PyTorch Conv3d weight layout: (out, in, kT, kH, kW)
    p["w1"] = conv_w(ks[0], (dim_inner, dim_in, kt, 1, 1))
    p["bn1"] = bn(ks[1], dim_inner)
    p["w2"] = conv_w(ks[2], (dim_inner, dim_inner, 1, 3, 3))
    p["bn2"] = bn(ks[3], dim_inner)
    p["w3"] = conv_w(ks[4], (dim_out, dim_inner, 1, 1, 1))
    p["bn3"] = bn(ks[5], dim_out)
    if not (dim_in == dim_out and temp_stride == 1 and stride == 1):
        p["w_sc"] = conv_w(ks[6], (dim_out, dim_in, 1, 1, 1))
        p["bn_sc"] = bn(ks[7], dim_out)
    return p


# ------------------------------ forward pass --------------------------------

def bottleneck_forward(x_ncthw, params, *, dim_in, dim_out, dim_inner,
                       stride, use_temp_conv, temp_stride):
    N, C, T, H, W = x_ncthw.shape
    assert C == dim_in
    kt = 1 + 2 * use_temp_conv
    pad_t = use_temp_conv

    # channels-last, bf16 activations
    x_cl = jnp.transpose(x_ncthw, (0, 2, 3, 4, 1)).astype(jnp.bfloat16)

    # ---- conv1: (kt,1,1) temporal conv, stride (temp_stride,1,1) + bn + relu
    Tout = (T + 2 * pad_t - kt) // temp_stride + 1
    xp = jnp.pad(x_cl, ((0, 0), (pad_t, pad_t), (0, 0), (0, 0), (0, 0)))
    taps = [xp[:, k: k + temp_stride * (Tout - 1) + 1: temp_stride]
            for k in range(kt)]
    x1 = jnp.concatenate(taps, axis=-1).reshape(N * Tout * H * W, kt * dim_in)
    s1, b1 = _fold_bn(*params["bn1"])
    # weight (O, I, kt, 1, 1) -> (kt*I, O), BN scale folded into the columns
    w1 = jnp.transpose(params["w1"][:, :, :, 0, 0], (2, 1, 0)).reshape(
        kt * dim_in, dim_inner) * s1[None, :]
    o1 = fused_matmul(x1, w1, b1, relu=True)
    o1 = o1.reshape(N, Tout, H, W, dim_inner)

    # ---- conv2: (1,3,3) spatial conv, stride (1,stride,stride), pad 1 ------
    Hout = (H + 2 - 3) // stride + 1
    Wout = (W + 2 - 3) // stride + 1
    o1p = jnp.pad(o1, ((0, 0), (0, 0), (1, 1), (1, 1), (0, 0)))
    taps = []
    for dh in range(3):
        for dw in range(3):
            taps.append(
                o1p[:, :,
                    dh: dh + stride * (Hout - 1) + 1: stride,
                    dw: dw + stride * (Wout - 1) + 1: stride, :])
    x2 = jnp.concatenate(taps, axis=-1).reshape(
        N * Tout * Hout * Wout, 9 * dim_inner)
    s2, b2 = _fold_bn(*params["bn2"])
    w2 = jnp.transpose(params["w2"][:, :, 0, :, :], (2, 3, 1, 0)).reshape(
        9 * dim_inner, dim_inner) * s2[None, :]
    o2 = fused_matmul(x2, w2, b2, relu=True)     # (M2, dim_inner) bf16

    # ---- conv3 (1,1,1) + bn3 + shortcut + relu, all fused in one kernel ----
    s3, b3 = _fold_bn(*params["bn3"])
    w3 = params["w3"][:, :, 0, 0, 0].T * s3[None, :]   # (dim_inner, dim_out)

    has_sc = not (dim_in == dim_out and temp_stride == 1 and stride == 1)
    xr = x_cl[:, 0:T:temp_stride, 0:H:stride, 0:W:stride, :]
    if has_sc:
        s_sc, b_sc = _fold_bn(*params["bn_sc"])
        w_sc = params["w_sc"][:, :, 0, 0, 0].T * s_sc[None, :]
        out = fused_matmul(o2, w3, b3 + b_sc, relu=True,
                           res_x=xr.reshape(-1, dim_in), res_w=w_sc,
                           out_dtype=jnp.float32)
    else:
        out = fused_matmul(o2, w3, b3, relu=True,
                           residual=xr.reshape(-1, dim_out),
                           out_dtype=jnp.float32)

    out = out.reshape(N, Tout, Hout, Wout, dim_out)
    return jnp.transpose(out, (0, 4, 1, 2, 3))  # back to NCTHW


# ------------------------- pure-JAX reference check -------------------------

def bottleneck_reference(x, params, *, dim_in, dim_out, dim_inner, stride,
                         use_temp_conv, temp_stride):
    dn = ("NCDHW", "OIDHW", "NCDHW")
    hi = lax.Precision.HIGHEST

    def bn(y, bnp):
        s, b = _fold_bn(*bnp)
        return y * s[None, :, None, None, None] + b[None, :, None, None, None]

    pad_t = use_temp_conv
    out = lax.conv_general_dilated(x, params["w1"], (temp_stride, 1, 1),
                                   ((pad_t, pad_t), (0, 0), (0, 0)),
                                   dimension_numbers=dn, precision=hi)
    out = jax.nn.relu(bn(out, params["bn1"]))
    out = lax.conv_general_dilated(out, params["w2"], (1, stride, stride),
                                   ((0, 0), (1, 1), (1, 1)),
                                   dimension_numbers=dn, precision=hi)
    out = jax.nn.relu(bn(out, params["bn2"]))
    out = lax.conv_general_dilated(out, params["w3"], (1, 1, 1),
                                   ((0, 0), (0, 0), (0, 0)),
                                   dimension_numbers=dn, precision=hi)
    out = bn(out, params["bn3"])
    if not (dim_in == dim_out and temp_stride == 1 and stride == 1):
        res = lax.conv_general_dilated(x, params["w_sc"],
                                       (temp_stride, stride, stride),
                                       ((0, 0), (0, 0), (0, 0)),
                                       dimension_numbers=dn, precision=hi)
        res = bn(res, params["bn_sc"])
    else:
        res = x
    return jax.nn.relu(out + res)


# ----------------------------------- main ------------------------------------

if __name__ == "__main__":
    # Config exercising every branch (temporal conv, spatial stride, shortcut).
    cfg = dict(dim_in=8, dim_out=16, dim_inner=4,
               stride=2, use_temp_conv=1, temp_stride=2)
    N, T, H, W = 2, 4, 8, 8

    key = jax.random.PRNGKey(0)
    kx, kp = jax.random.split(key)
    x = jax.random.normal(kx, (N, cfg["dim_in"], T, H, W), jnp.float32)
    params = init_params(kp, cfg["dim_in"], cfg["dim_out"], cfg["dim_inner"],
                         cfg["use_temp_conv"], cfg["temp_stride"],
                         cfg["stride"])

    out = jax.block_until_ready(bottleneck_forward(x, params, **cfg))
    ref = jax.block_until_ready(bottleneck_reference(x, params, **cfg))

    assert out.shape == ref.shape, (out.shape, ref.shape)
    # bf16 operands / intermediates vs an f32-HIGHEST reference: allow a few %.
    err = jnp.abs(out - ref)
    assert float(jnp.max(err)) < 1e-1, float(jnp.max(err))
    assert float(jnp.mean(err)) < 2e-2, float(jnp.mean(err))

    print("KERNEL_OK")
</pallas_src>

<mosaic_0001>
module attributes {stable_mosaic.version = 11 : i64} {
  func.func @_fused_matmul_kernel(%arg0: i32, %arg1: i32, %arg2: i32, %arg3: memref<256x128xbf16, #tpu.memory_space<vmem>>, %arg4: memref<128x128xbf16, #tpu.memory_space<vmem>>, %arg5: memref<1x128xf32, #tpu.memory_space<vmem>>, %arg6: memref<256x128xbf16, #tpu.memory_space<vmem>>, %arg7: memref<256x128xf32, #tpu.memory_space<vmem>>) attributes {dimension_semantics = [#tpu.dimension_semantics<parallel>, #tpu.dimension_semantics<parallel>, #tpu.dimension_semantics<arbitrary>], iteration_bounds = array<i64: 1, 1, 1>, scalar_prefetch = 0 : i64, scratch_operands = 1 : i64, tpu.core_type = #tpu.core_type<tc>, window_params = [{transform_indices = @transform_0, window_bounds = array<i64: 256, 128>}, {transform_indices = @transform_1, window_bounds = array<i64: 128, 128>}, {transform_indices = @transform_2, window_bounds = array<i64: 1, 128>}, {transform_indices = @transform_3, window_bounds = array<i64: 256, 128>}]} {
    %c0_i32 = arith.constant 0 : i32
    %0 = arith.cmpi eq, %arg2, %c0_i32 : i32
    %1 = arith.extui %0 : i1 to i32
    %c0_i32_0 = arith.constant 0 : i32
    %2 = arith.cmpi ne, %1, %c0_i32_0 : i32
    scf.if %2 {
      %cst_10 = arith.constant 0.000000e+00 : f32
      %12 = vector.broadcast %cst_10 : f32 to vector<256x128xf32>
      %c0_11 = arith.constant 0 : index
      %c0_12 = arith.constant 0 : index
      %13 = vector.load %arg7[%c0_11, %c0_12] : memref<256x128xf32, #tpu.memory_space<vmem>>, vector<256x128xf32>
      tpu.vector_store %arg7[%c0_11, %c0_12], %12 {strides = array<i32>} : memref<256x128xf32, #tpu.memory_space<vmem>>, vector<256x128xf32>,
    } else {
    }
    %c0 = arith.constant 0 : index
    %c0_1 = arith.constant 0 : index
    %3 = vector.load %arg7[%c0, %c0_1] : memref<256x128xf32, #tpu.memory_space<vmem>>, vector<256x128xf32>
    %c0_2 = arith.constant 0 : index
    %c0_3 = arith.constant 0 : index
    %4 = vector.load %arg3[%c0_2, %c0_3] : memref<256x128xbf16, #tpu.memory_space<vmem>>, vector<256x128xbf16>
    %c0_4 = arith.constant 0 : index
    %c0_5 = arith.constant 0 : index
    %5 = vector.load %arg4[%c0_4, %c0_5] : memref<128x128xbf16, #tpu.memory_space<vmem>>, vector<128x128xbf16>
    %cst = arith.constant dense<0.000000e+00> : vector<256x128xf32>
    %6 = tpu.matmul %4, %5, %cst {dimension_numbers = #tpu.dot_dimension_numbers<[1], [0], [0], [1], [0, 0, 1, 1], [], []>} : vector<256x128xbf16>, vector<128x128xbf16>, vector<256x128xf32> -> vector<256x128xf32>
    %7 = arith.addf %3, %6 : vector<256x128xf32>
    %c0_6 = arith.constant 0 : index
    %c0_7 = arith.constant 0 : index
    %8 = vector.load %arg7[%c0_6, %c0_7] : memref<256x128xf32, #tpu.memory_space<vmem>>, vector<256x128xf32>
    tpu.vector_store %arg7[%c0_6, %c0_7], %7 {strides = array<i32>} : memref<256x128xf32, #tpu.memory_space<vmem>>, vector<256x128xf32>,
    %c0_i32_8 = arith.constant 0 : i32
    %9 = arith.cmpi eq, %arg2, %c0_i32_8 : i32
    %10 = arith.extui %9 : i1 to i32
    %c0_i32_9 = arith.constant 0 : i32
    %11 = arith.cmpi ne, %10, %c0_i32_9 : i32
    scf.if %11 {
      %c0_10 = arith.constant 0 : index
      %c0_11 = arith.constant 0 : index
      %12 = vector.load %arg7[%c0_10, %c0_11] : memref<256x128xf32, #tpu.memory_space<vmem>>, vector<256x128xf32>
      %c0_12 = arith.constant 0 : index
      %c0_13 = arith.constant 0 : index
      %13 = vector.load %arg5[%c0_12, %c0_13] : memref<1x128xf32, #tpu.memory_space<vmem>>, vector<1x128xf32>
      %14 = vector.broadcast %13 : vector<1x128xf32> to vector<256x128xf32>
      %15 = arith.addf %12, %14 : vector<256x128xf32>
      %cst_14 = arith.constant 0.000000e+00 : f32
      %16 = vector.broadcast %cst_14 : f32 to vector<256x128xf32>
      %17 = arith.maximumf %15, %16 : vector<256x128xf32>
      %18 = arith.truncf %17 : vector<256x128xf32> to vector<256x128xbf16>
      %c0_15 = arith.constant 0 : index
      %c0_16 = arith.constant 0 : index
      %19 = vector.load %arg6[%c0_15, %c0_16] : memref<256x128xbf16, #tpu.memory_space<vmem>>, vector<256x128xbf16>
      tpu.vector_store %arg6[%c0_15, %c0_16], %18 {strides = array<i32>} : memref<256x128xbf16, #tpu.memory_space<vmem>>, vector<256x128xbf16>,
    } else {
    }
    return
  }
  func.func @transform_0(%arg0: i32, %arg1: i32, %arg2: i32) -> (i32, i32) {
    %c0_i32 = arith.constant 0 : i32
    return %arg0, %arg2 : i32, i32
  }
  func.func @transform_1(%arg0: i32, %arg1: i32, %arg2: i32) -> (i32, i32) {
    %c0_i32 = arith.constant 0 : i32
    return %arg2, %arg1 : i32, i32
  }
  func.func @transform_2(%arg0: i32, %arg1: i32, %arg2: i32) -> (i32, i32) {
    %c0_i32 = arith.constant 0 : i32
    %c0_i32_0 = arith.constant 0 : i32
    return %c0_i32, %arg1 : i32, i32
  }
  func.func @transform_3(%arg0: i32, %arg1: i32, %arg2: i32) -> (i32, i32) {
    %c0_i32 = arith.constant 0 : i32
    return %arg0, %arg1 : i32, i32
  }
}

</mosaic_0001>

<bundles_post_ra>
// kernel: tpu_custom_call.1
= control target key start
LH: loop header
LB: loop body
LE: loop exit
PB: predicated region body
PF: predicated region fallthrough
CT: control target
= control target key end

     0   :  { %8 = vsyncpa [#allocation4], 0  ;;  %s1260_s0 = inlined_call_operand.hbm [shape: bf16[256,128], index: 0, kind: input, shape index: {}]   ;;  %s1261_s1 = inlined_call_operand.hbm [shape: bf16[128,128], index: 1, kind: input, shape index: {}]   ;;  %s1262_s2 = inlined_call_operand.vmem [shape: f32[1,128], index: 2, kind: input, shape index: {}]   ;;  %s1263_s3 = inlined_call_operand.hbm [shape: bf16[256,128], index: 3, kind: output, shape index: {}]  }
   0x1   :  { %9 = vsyncpa [#allocation7], 0 }
   0x2   :  { %10 = vsyncpa [#allocation5], 0  ;;  %s1180_s12 = smov [#allocation3]  }
   0x3   :  { %s16_s13 = sshll.u32 %s1180_s12, 4  ;;  %s17_s13 = int_to_ptr.vmem [resolvable:$true] %s16_s13 }
   0x4   :  { %s1122_s14 = scalar_lea.vmem %s17_s13, 2048  ;;  %p1127_p1 = scmp.lt.s32.totalorder %s17_s13, %s17_s13 }
   0x5   :  { %p1123_p0 = scmp.ne.s32.totalorder %s17_s13, %s1122_s14  ;;  %p1128_p2 = scmp.lt.s32.totalorder %s1122_s14, %s1122_s14 }
   0x7   :  { %p1129_p3 = por %p1128_p2, %p1127_p1 }
   0x9   :  { %p1130_p4 = pnand %p1129_p3, %p1123_p0 }
   0xb   :  { %1133 = shalt.err (!%p1130_p4)
}
   0xc   :  { %s1181_s15 = smov 64   ;;  %s1182_s16 = smov 4  }
   0xd   :  { %22 = dma.hbm_to_vmem [thread:$0]  %s1260_s0, 2048, %s17_s13, [#allocation4], %s1181_s15, %s1181_s15, %s1182_s16  }
   0xe   :  { %s1183_s19 = smov [#allocation6]  }
   0xf   :  { %s28_s20 = sshll.u32 %s1183_s19, 4  ;;  %s29_s20 = int_to_ptr.vmem [resolvable:$true] %s28_s20 }
  0x10   :  { %s1142_s21 = scalar_lea.vmem %s29_s20, 1024  ;;  %p1147_p6 = scmp.lt.s32.totalorder %s29_s20, %s29_s20 }
  0x11   :  { %p1143_p5 = scmp.ne.s32.totalorder %s29_s20, %s1142_s21  ;;  %p1148_p7 = scmp.lt.s32.totalorder %s1142_s21, %s1142_s21 }
  0x13   :  { %p1149_p8 = por %p1148_p7, %p1147_p6 }
  0x15   :  { %p1150_p9 = pnand %p1149_p8, %p1143_p5 }
  0x17   :  { %1153 = shalt.err (!%p1150_p9)
}
  0x18   :  { %34 = dma.hbm_to_vmem [thread:$0]  %s1261_s1, 1024, %s29_s20, [#allocation7], %s1181_s15, %s1181_s15, %s1182_s16  }
  0x19   :  { %1174 = dma.done.wait [#allocation4], 2048  }
  0x1a   :  { %1175 = vsyncadd [#allocation4], 4294965248 }
  0x1b   :  { %1176 = dma.done.wait [#allocation7], 1024  }
  0x1c   :  { %1177 = vsyncadd [#allocation7], 4294966272  ;;  %v1090_v0 = vld [vmem:[#allocation6 + $0x38] sm:$0xff]   ;;  %v1091_v1 = vld [vmem:[#allocation6 + $0x30] sm:$0xff]  }
  0x1d   :  { %1021 = vmatprep.subr.bf16.mxu0 %v1090_v0  ;;  %1069 = vmatprep.subr.bf16.mxu1 %v1090_v0  ;;  %v1092_v2 = vld [vmem:[#allocation6 + $0x28] sm:$0xff]   ;;  %v1093_v3 = vld [vmem:[#allocation6 + $0x20] sm:$0xff]   ;;  %v1094_v6 = vld [vmem:[#allocation6 + $0x18] sm:$0xff]  }
  0x1e   :  { %1022 = vmatpush3.bf16.msra.mxu0 %v1090_v0  ;;  %1077 = vmatpush3.bf16.msra.mxu1 %v1090_v0  ;;  %v1098_v4 = vld [vmem:[#allocation3] sm:$0xff]   ;;  %v1095_v7 = vld [vmem:[#allocation6 + $0x10] sm:$0xff]   ;;  %v1096_v8 = vld [vmem:[#allocation6 + $0x8] sm:$0xff]  }
  0x1f   :  { %1023 = vmatprep.subr.bf16.mxu0 %v1091_v1  ;;  %1070 = vmatprep.subr.bf16.mxu1 %v1091_v1  ;;  %v1099_v5 = vld [vmem:[#allocation3 + $0x40] sm:$0xff]   ;;  %v1100_v10 = vld [vmem:[#allocation3 + $0x8] sm:$0xff]   ;;  %v1102_v12 = vld [vmem:[#allocation3 + $0x10] sm:$0xff]  }
  0x20   :  { %1037 = vmatprep.mubr.bf16.mxu0 %v1098_v4  ;;  %1053 = vmatprep.mubr.bf16.mxu1 %v1099_v5  ;;  %v1097_v9 = vld [vmem:[#allocation6] sm:$0xff]   ;;  %v1101_v11 = vld [vmem:[#allocation3 + $0x48] sm:$0xff]   ;;  %v1103_v13 = vld [vmem:[#allocation3 + $0x50] sm:$0xff]  }
  0x21   :  { %v1104_v14 = vld [vmem:[#allocation3 + $0x18] sm:$0xff]   ;;  %v1106_v16 = vld [vmem:[#allocation3 + $0x20] sm:$0xff]   ;;  %v1108_v18 = vld [vmem:[#allocation3 + $0x28] sm:$0xff]  }
  0x22   :  { %1024 = vmatpush3.bf16.msra.mxu0 %v1091_v1  ;;  %1078 = vmatpush3.bf16.msra.mxu1 %v1091_v1  ;;  %v1105_v15 = vld [vmem:[#allocation3 + $0x58] sm:$0xff]   ;;  %v1107_v17 = vld [vmem:[#allocation3 + $0x60] sm:$0xff]   ;;  %v1109_v19 = vld [vmem:[#allocation3 + $0x68] sm:$0xff]  }
  0x23   :  { %1025 = vmatprep.subr.bf16.mxu0 %v1092_v2  ;;  %1071 = vmatprep.subr.bf16.mxu1 %v1092_v2  ;;  %v1110_v20 = vld [vmem:[#allocation3 + $0x30] sm:$0xff]   ;;  %v1112_v22 = vld [vmem:[#allocation3 + $0x38] sm:$0xff]   ;;  %v1220_v24 = vld [vmem:[%s1262_s2] ss:$0 sm:$0xff]  ;;  %s1184_s2 = smov [#allocation8]  }
  0x24   :  { %v1111_v21 = vld [vmem:[#allocation3 + $0x70] sm:$0xff]   ;;  %v1113_v23 = vld [vmem:[#allocation3 + $0x78] sm:$0xff]   ;;  %s800_s24 = sshll.u32 %s1184_s2, 4  ;;  %s801_s24 = int_to_ptr.vmem [resolvable:$true] %s800_s24 }
  0x25   :  { %s1154_s25 = scalar_lea.vmem %s801_s24, 2048  ;;  %p1159_p11 = scmp.lt.s32.totalorder %s801_s24, %s801_s24 }
  0x26   :  { %1026 = vmatpush3.bf16.msra.mxu0 %v1092_v2  ;;  %1079 = vmatpush3.bf16.msra.mxu1 %v1092_v2  ;;  %p1155_p10 = scmp.ne.s32.totalorder %s801_s24, %s1154_s25  ;;  %p1160_p12 = scmp.lt.s32.totalorder %s1154_s25, %s1154_s25 }
  0x27   :  { %1027 = vmatprep.subr.bf16.mxu0 %v1093_v3  ;;  %1072 = vmatprep.subr.bf16.mxu1 %v1093_v3 }
  0x28   :  { %p1161_p13 = por %p1160_p12, %p1159_p11 }
  0x2a   :  { %1028 = vmatpush3.bf16.msra.mxu0 %v1093_v3  ;;  %1080 = vmatpush3.bf16.msra.mxu1 %v1093_v3  ;;  %p1162_p0 = pnand %p1161_p13, %p1155_p10 }
  0x2b   :  { %1029 = vmatprep.subr.bf16.mxu0 %v1094_v6  ;;  %1073 = vmatprep.subr.bf16.mxu1 %v1094_v6 }
  0x2e   :  { %1030 = vmatpush3.bf16.msra.mxu0 %v1094_v6  ;;  %1081 = vmatpush3.bf16.msra.mxu1 %v1094_v6 }
  0x2f   :  { %1031 = vmatprep.subr.bf16.mxu0 %v1095_v7  ;;  %1074 = vmatprep.subr.bf16.mxu1 %v1095_v7 }
  0x32   :  { %1032 = vmatpush3.bf16.msra.mxu0 %v1095_v7  ;;  %1082 = vmatpush3.bf16.msra.mxu1 %v1095_v7 }
  0x33   :  { %1033 = vmatprep.subr.bf16.mxu0 %v1096_v8  ;;  %1075 = vmatprep.subr.bf16.mxu1 %v1096_v8 }
  0x36   :  { %1034 = vmatpush3.bf16.msra.mxu0 %v1096_v8  ;;  %1083 = vmatpush3.bf16.msra.mxu1 %v1096_v8 }
  0x37   :  { %1035 = vmatprep.subr.bf16.mxu0 %v1097_v9  ;;  %1076 = vmatprep.subr.bf16.mxu1 %v1097_v9 }
  0x3a   :  { %1036 = vmatpush3.bf16.msra.mxu0 %v1097_v9  ;;  %1084 = vmatpush3.bf16.msra.mxu1 %v1097_v9 }
  0x3d   :  { %1038 = vmatmul.mubr.bf16.vlgmr.msra.gmra.mxu0 %v1100_v10  ;;  %1054 = vmatmul.mubr.bf16.vlgmr.msra.gmra.mxu1 %v1101_v11 }
  0x3e   :  { %1041 = vmatprep.mubr.bf16.mxu0 %v1102_v12  ;;  %1057 = vmatprep.mubr.bf16.mxu1 %v1103_v13 }
  0x45   :  { %1042 = vmatmul.mubr.bf16.gmra.mxu0 %v1104_v14  ;;  %1058 = vmatmul.mubr.bf16.gmra.mxu1 %v1105_v15 }
  0x46   :  { %1045 = vmatprep.mubr.bf16.mxu0 %v1106_v16  ;;  %1061 = vmatprep.mubr.bf16.mxu1 %v1107_v17 }
  0x4d   :  { %1046 = vmatmul.mubr.bf16.gmra.mxu0 %v1108_v18  ;;  %1062 = vmatmul.mubr.bf16.gmra.mxu1 %v1109_v19 }
  0x4e   :  { %1049 = vmatprep.mubr.bf16.mxu0 %v1110_v20  ;;  %1065 = vmatprep.mubr.bf16.mxu1 %v1111_v21 }
  0x55   :  { %1050 = vmatmul.mubr.bf16.gmra.mxu0 %v1112_v22  ;;  %1066 = vmatmul.mubr.bf16.gmra.mxu1 %v1113_v23 }
  0xfd   :  { %v1039_v25 = vpop.f32.mrf.mxu0  ;;  %v1055_v26 = vpop.f32.mrf.mxu1 }
  0xfe   :  { %v573_v27 = vadd.f32 %v1039_v25, %v1220_v24  ;;  %v589_v28 = vadd.f32 %v1055_v26, %v1220_v24 }
  0xff   :  { %v338_v29 = vpop.f32.mrf.mxu0  ;;  %v402_v30 = vpop.f32.mrf.mxu1 }
 0x100   :  { %v571_v31 = vadd.f32 %v1220_v24, %v338_v29  ;;  %v587_v32 = vadd.f32 %v1220_v24, %v402_v30  ;;  %v605_v37 = vmax.f32 %v573_v27, 0.0  ;;  %v621_v38 = vmax.f32 %v589_v28, 0.0 }
 0x101   :  { %v1040_v33 = vpop.f32.mrf.mxu0  ;;  %v1056_v34 = vpop.f32.mrf.mxu1 }
 0x102   :  { %v574_v35 = vadd.f32 %v1040_v33, %v1220_v24  ;;  %v590_v36 = vadd.f32 %v1056_v34, %v1220_v24  ;;  %v603_v45 = vmax.f32 %v571_v31, 0.0  ;;  %v619_v46 = vmax.f32 %v587_v32, 0.0 }
 0x103   :  { %v341_v39 = vpop.f32.mrf.mxu0  ;;  %v405_v40 = vpop.f32.mrf.mxu1 }
 0x104   :  { %v606_v41 = vmax.f32 %v574_v35, 0.0  ;;  %v622_v42 = vmax.f32 %v590_v36, 0.0  ;;  %v572_v43 = vadd.f32 %v1220_v24, %v341_v39  ;;  %v588_v44 = vadd.f32 %v1220_v24, %v405_v40 }
 0x105   :  { %v1043_v47 = vpop.f32.mrf.mxu0  ;;  %v1059_v48 = vpop.f32.mrf.mxu1 }
 0x106   :  { %v910_v49 = vpack.c.bf16 %v606_v41, %v605_v37  ;;  %v950_v50 = vpack.c.bf16 %v622_v42, %v621_v38  ;;  %v604_v51 = vmax.f32 %v572_v43, 0.0  ;;  %v620_v52 = vmax.f32 %v588_v44, 0.0 }
 0x107   :  { %v577_v53 = vadd.f32 %v1043_v47, %v1220_v24  ;;  %v593_v54 = vadd.f32 %v1059_v48, %v1220_v24  ;;  %v354_v55 = vpop.f32.mrf.mxu0  ;;  %v418_v56 = vpop.f32.mrf.mxu1 }
 0x108   :  { %982 = vst [vmem:[#allocation8 + $0x8] sm:$0xff] %v910_v49   ;;  %990 = vst [vmem:[#allocation8 + $0x48] sm:$0xff] %v950_v50   ;;  %v905_v57 = vpack.c.bf16 %v604_v51, %v603_v45  ;;  %v945_v58 = vpack.c.bf16 %v620_v52, %v619_v46  ;;  %v575_v59 = vadd.f32 %v1220_v24, %v354_v55 }
 0x109   :  { %v591_v60 = vadd.f32 %v1220_v24, %v418_v56  ;;  %v1044_v61 = vpop.f32.mrf.mxu0  ;;  %v1060_v62 = vpop.f32.mrf.mxu1  ;;  %v609_v1 = vmax.f32 %v577_v53, 0.0  ;;  %v625_v2 = vmax.f32 %v593_v54, 0.0 }
 0x10a   :  { %906 = vst [vmem:[#allocation8] sm:$0xff] %v905_v57   ;;  %989 = vst [vmem:[#allocation8 + $0x40] sm:$0xff] %v945_v58   ;;  %v578_v63 = vadd.f32 %v1044_v61, %v1220_v24  ;;  %v594_v0 = vadd.f32 %v1060_v62, %v1220_v24  ;;  %v607_v9 = vmax.f32 %v575_v59, 0.0 }
 0x10b   :  { %v357_v3 = vpop.f32.mrf.mxu0  ;;  %v421_v4 = vpop.f32.mrf.mxu1  ;;  %v623_v10 = vmax.f32 %v591_v60, 0.0 }
 0x10c   :  { %v610_v5 = vmax.f32 %v578_v63, 0.0  ;;  %v626_v6 = vmax.f32 %v594_v0, 0.0  ;;  %v576_v7 = vadd.f32 %v1220_v24, %v357_v3  ;;  %v592_v8 = vadd.f32 %v1220_v24, %v421_v4 }
 0x10d   :  { %v1047_v11 = vpop.f32.mrf.mxu0  ;;  %v1063_v12 = vpop.f32.mrf.mxu1 }
 0x10e   :  { %v920_v13 = vpack.c.bf16 %v610_v5, %v609_v1  ;;  %v960_v14 = vpack.c.bf16 %v626_v6, %v625_v2  ;;  %v608_v15 = vmax.f32 %v576_v7, 0.0  ;;  %v624_v16 = vmax.f32 %v592_v8, 0.0 }
 0x10f   :  { %v581_v17 = vadd.f32 %v1047_v11, %v1220_v24  ;;  %v597_v18 = vadd.f32 %v1063_v12, %v1220_v24  ;;  %v370_v19 = vpop.f32.mrf.mxu0  ;;  %v434_v20 = vpop.f32.mrf.mxu1 }
 0x110   :  { %984 = vst [vmem:[#allocation8 + $0x18] sm:$0xff] %v920_v13   ;;  %992 = vst [vmem:[#allocation8 + $0x58] sm:$0xff] %v960_v14   ;;  %v915_v21 = vpack.c.bf16 %v608_v15, %v607_v9  ;;  %v955_v22 = vpack.c.bf16 %v624_v16, %v623_v10  ;;  %v579_v23 = vadd.f32 %v1220_v24, %v370_v19 }
 0x111   :  { %v595_v25 = vadd.f32 %v1220_v24, %v434_v20  ;;  %v1048_v26 = vpop.f32.mrf.mxu0  ;;  %v1064_v27 = vpop.f32.mrf.mxu1  ;;  %v613_v30 = vmax.f32 %v581_v17, 0.0  ;;  %v629_v31 = vmax.f32 %v597_v18, 0.0 }
 0x112   :  { %983 = vst [vmem:[#allocation8 + $0x10] sm:$0xff] %v915_v21   ;;  %991 = vst [vmem:[#allocation8 + $0x50] sm:$0xff] %v955_v22   ;;  %v582_v28 = vadd.f32 %v1048_v26, %v1220_v24  ;;  %v598_v29 = vadd.f32 %v1064_v27, %v1220_v24  ;;  %v611_v38 = vmax.f32 %v579_v23, 0.0 }
 0x113   :  { %v373_v32 = vpop.f32.mrf.mxu0  ;;  %v437_v33 = vpop.f32.mrf.mxu1  ;;  %v627_v39 = vmax.f32 %v595_v25, 0.0 }
 0x114   :  { %v614_v34 = vmax.f32 %v582_v28, 0.0  ;;  %v630_v35 = vmax.f32 %v598_v29, 0.0  ;;  %v580_v36 = vadd.f32 %v1220_v24, %v373_v32  ;;  %v596_v37 = vadd.f32 %v1220_v24, %v437_v33 }
 0x115   :  { %v1051_v40 = vpop.f32.mrf.mxu0  ;;  %v1067_v41 = vpop.f32.mrf.mxu1 }
 0x116   :  { %v930_v42 = vpack.c.bf16 %v614_v34, %v613_v30  ;;  %v970_v43 = vpack.c.bf16 %v630_v35, %v629_v31  ;;  %v612_v44 = vmax.f32 %v580_v36, 0.0  ;;  %v628_v45 = vmax.f32 %v596_v37, 0.0 }
 0x117   :  { %v585_v46 = vadd.f32 %v1051_v40, %v1220_v24  ;;  %v601_v47 = vadd.f32 %v1067_v41, %v1220_v24  ;;  %v386_v48 = vpop.f32.mrf.mxu0  ;;  %v450_v49 = vpop.f32.mrf.mxu1 }
 0x118   :  { %986 = vst [vmem:[#allocation8 + $0x28] sm:$0xff] %v930_v42   ;;  %994 = vst [vmem:[#allocation8 + $0x68] sm:$0xff] %v970_v43   ;;  %v925_v50 = vpack.c.bf16 %v612_v44, %v611_v38  ;;  %v965_v51 = vpack.c.bf16 %v628_v45, %v627_v39  ;;  %v583_v52 = vadd.f32 %v1220_v24, %v386_v48 }
 0x119   :  { %v599_v53 = vadd.f32 %v1220_v24, %v450_v49  ;;  %v1052_v54 = vpop.f32.mrf.mxu0  ;;  %v1068_v55 = vpop.f32.mrf.mxu1  ;;  %v617_v58 = vmax.f32 %v585_v46, 0.0  ;;  %v633_v59 = vmax.f32 %v601_v47, 0.0 }
 0x11a   :  { %985 = vst [vmem:[#allocation8 + $0x20] sm:$0xff] %v925_v50   ;;  %993 = vst [vmem:[#allocation8 + $0x60] sm:$0xff] %v965_v51   ;;  %v586_v56 = vadd.f32 %v1052_v54, %v1220_v24  ;;  %v602_v57 = vadd.f32 %v1068_v55, %v1220_v24  ;;  %v615_v2 = vmax.f32 %v583_v52, 0.0 }
 0x11b   :  { %v389_v60 = vpop.f32.mrf.mxu0  ;;  %v453_v61 = vpop.f32.mrf.mxu1  ;;  %v631_v3 = vmax.f32 %v599_v53, 0.0 }
 0x11c   :  { %v618_v62 = vmax.f32 %v586_v56, 0.0  ;;  %v634_v63 = vmax.f32 %v602_v57, 0.0  ;;  %v584_v0 = vadd.f32 %v1220_v24, %v389_v60  ;;  %v600_v1 = vadd.f32 %v1220_v24, %v453_v61 }
 0x11e   :  { %v940_v4 = vpack.c.bf16 %v618_v62, %v617_v58  ;;  %v980_v5 = vpack.c.bf16 %v634_v63, %v633_v59  ;;  %v616_v6 = vmax.f32 %v584_v0, 0.0  ;;  %v632_v7 = vmax.f32 %v600_v1, 0.0 }
 0x120   :  { %988 = vst [vmem:[#allocation8 + $0x38] sm:$0xff] %v940_v4   ;;  %996 = vst [vmem:[#allocation8 + $0x78] sm:$0xff] %v980_v5   ;;  %v935_v8 = vpack.c.bf16 %v616_v6, %v615_v2  ;;  %v975_v9 = vpack.c.bf16 %v632_v7, %v631_v3 }
 0x122   :  { %987 = vst [vmem:[#allocation8 + $0x30] sm:$0xff] %v935_v8   ;;  %995 = vst [vmem:[#allocation8 + $0x70] sm:$0xff] %v975_v9  }
 0x123   :  { %1165 = shalt.err (!%p1162_p0)
}
 0x124   :  { %806 = dma.vmem_to_hbm [thread:$0]  %s801_s24, 2048, %s1263_s3, [#allocation5], %s1181_s15, %s1181_s15, %s1182_s16  }
 0x125   :  { %1178 = dma.done.wait [#allocation5], 2048  }
 0x126   :  { %1179 = vsyncadd [#allocation5], 4294965248 }
 0x127   :  { %810 = vsyncpa [#allocation4], 1 }
 0x128   :  { %811 = vsyncpa [#allocation7], 1 }
 0x129   :  { %812 = vsyncpa [#allocation5], 1 }

</bundles_post_ra>
